<compile_context>
chip_gen: v7x
topology: tpu7x:2x2x1
jax: 0.10.0
libtpu: 0.0.40
codegen_flags: <defaults>
</compile_context>

<pallas_src>
import functools

import jax
import jax.numpy as jnp
from jax.experimental import pallas as pl
from jax.experimental.pallas import tpu as pltpu


def _conv_gn_mish_kernel(x_ref, w_ref, s_ref, st_ref, gmap2_ref, gmapt2_ref,
                         params_ref, o_ref, *, eps, t_len, n_groups, c_out,
                         approx_math):
    """One grid step: B_blk samples folded into the lane axis.

    x_ref:      (1, C_in_pad, Np + 2*pad)  halo-layout activations (MXU dtype)
    w_ref:      (K, C_out_pad, C_in_pad)   per-tap conv weights    (MXU dtype)
    s_ref:      (Np, B_blk)       f32  one-hot: valid lane -> its sample
    st_ref:     (B_blk, Np)       f32  one-hot: sample -> lanes of its chunk
    gmap2_ref:  (2G, 2*C_out_pad) f32  block-diag channel -> group map
    gmapt2_ref: (2*C_out_pad, 2G) f32  block-diag group -> channel map
    params_ref: (C_out_pad, 4)    f32  [conv bias | gamma | beta | unused]
    o_ref:      (1, C_out_pad, Np)
    """
    K = w_ref.shape[0]
    C_pad = o_ref.shape[1]
    Np = o_ref.shape[2]
    G = n_groups
    T = t_len
    f32 = jnp.float32

    # --- Conv1d: K shifted, lane-dense MXU matmuls, f32 accumulation --------
    # (in-kernel im2col: tap k reads the input window shifted by k lanes; the
    #  per-sample zero halo keeps taps from mixing neighbouring samples)
    c = jnp.dot(w_ref[0], x_ref[0, :, 0:Np], preferred_element_type=f32)
    for k in range(1, K):
        c = c + jnp.dot(w_ref[k], x_ref[0, :, k:k + Np],
                        preferred_element_type=f32)                # (C_pad, Np)

    bias = params_ref[:, 0:1]                                      # (C_pad, 1)
    gamma = params_ref[:, 1:2]
    beta = params_ref[:, 2:3]

    # --- GroupNorm stats: fused one-hot matmuls (conv bias folded in) -------
    cstack = jnp.concatenate([c, c * c], axis=0)                   # (2C, Np)
    s12 = jnp.dot(cstack, s_ref[...], preferred_element_type=f32)  # (2C, B_blk)
    s1c = s12[:C_pad]
    s2c = s12[C_pad:]
    s1 = s1c + bias * T
    s2 = s2c + 2.0 * bias * s1c + (bias * bias) * T
    g12 = jnp.dot(gmap2_ref[...], jnp.concatenate([s1, s2], axis=0),
                  preferred_element_type=f32)                      # (2G, B_blk)
    inv_n = 1.0 / float((c_out // G) * T)
    mean_g = g12[:G] * inv_n
    # clamp: guards E[x^2]-E[x]^2 cancellation from going slightly negative
    var_g = jnp.maximum(g12[G:] * inv_n - mean_g * mean_g, 0.0)
    inv_std_g = jax.lax.rsqrt(var_g + eps)                         # (G, B_blk)

    # --- fused per-(channel, sample) scale / shift, expanded to lanes -------
    mi = jnp.dot(gmapt2_ref[...],
                 jnp.concatenate([mean_g, inv_std_g], axis=0),
                 preferred_element_type=f32)                       # (2C, B_blk)
    scale_cb = gamma * mi[C_pad:]                                  # gamma/std
    shift_cb = beta + (bias - mi[:C_pad]) * scale_cb
    ssn = jnp.dot(jnp.concatenate([scale_cb, shift_cb], axis=0), st_ref[...],
                  preferred_element_type=f32)                      # (2C, Np)
    yn = c * ssn[:C_pad] + ssn[C_pad:]                             # GN output

    # --- Mish: x*tanh(softplus(x)) == x * p/(p+2), p = e^x*(e^x+2) ----------
    e = jnp.exp(jnp.minimum(yn, 20.0))      # one EUP exp; mish(x)=x for x>=20
    p = e * (e + 2.0)
    if approx_math:
        out = yn * p * pl.reciprocal(p + 2.0, approx=True)         # EUP vrcp
    else:
        out = yn * (p / (p + 2.0))
    o_ref[0] = out.astype(o_ref.dtype)


def diffusion_conv1d_block(x, weight, bias, gamma, beta, *, n_groups, eps=1e-5,
                           mxu_dtype=jnp.bfloat16, batch_block=None,
                           out_dtype=None, approx_math=True):
    """x: (B, C_in, T). weight: (C_out, C_in, K). Returns (B, C_out, T)."""
    B, C_in, T = x.shape
    C_out, _, K = weight.shape
    assert K % 2 == 1, "kernel assumes odd kernel_size (PyTorch padding=K//2)"
    assert C_out % n_groups == 0, "C_out must be divisible by n_groups"
    G = n_groups
    pad = K // 2
    T_pad = T + 2 * pad
    out_dtype = x.dtype if out_dtype is None else out_dtype

    in_item = jnp.dtype(mxu_dtype).itemsize
    out_item = jnp.dtype(out_dtype).itemsize
    sub = 8 * max(1, 4 // in_item)               # sublane packing multiple
    C_in_pad = ((C_in + sub - 1) // sub) * sub
    C_out_pad = ((C_out + sub - 1) // sub) * sub

    # --- per-step VMEM estimate: double-buffered I/O + f32 intermediates ----
    def vmem_bytes(b_blk):
        npl = b_blk * T_pad
        return (2 * C_in_pad * (npl + 2 * pad) * in_item      # activation
                + 2 * C_out_pad * npl * out_item              # output
                + 2 * K * C_out_pad * C_in_pad * in_item      # weights
                + 4 * npl * b_blk * 4                         # S + ST
                + 6 * C_out_pad * npl * 4)                    # intermediates

    # --- batch-block heuristic: lane-dense (x128) stores, ~1-2k lanes/step,
    #     >=2 grid steps when cheap (v7x 2 TensorCores), VMEM budget (v7x). --
    if batch_block is None:
        budget = 24 << 20
        divs = [d for d in range(1, B + 1) if B % d == 0]
        feas = [d for d in divs if vmem_bytes(d) <= budget] or [1]
        lane = [d for d in feas if (d * T_pad) % 128 == 0]
        pool = lane if lane else feas
        good = [d for d in pool if 512 <= d * T_pad <= 2048]
        if good:
            multi = [d for d in good if B // d >= 2]
            batch_block = max(multi if multi else good, key=lambda d: d * T_pad)
        else:
            batch_block = min(pool, key=lambda d: abs(d * T_pad - 1024))
    B_blk = batch_block
    assert B % B_blk == 0
    n_blk = B // B_blk
    Np = B_blk * T_pad

    # --- host-side prep: ONE fused pad+cast+transpose pass (no im2col) ------
    x_h = jnp.pad(x.astype(mxu_dtype), ((0, 0), (0, 0), (pad, pad)))
    x_h = x_h.reshape(n_blk, B_blk, C_in, T_pad)
    x_h = jnp.transpose(x_h, (0, 2, 1, 3)).reshape(n_blk, C_in, Np)
    x_h = jnp.pad(x_h, ((0, 0), (0, C_in_pad - C_in), (pad, pad)))
    # -> (n_blk, C_in_pad, Np + 2*pad)

    w_t = jnp.transpose(weight, (2, 0, 1)).astype(mxu_dtype)     # (K, Co, Ci)
    w_t = jnp.pad(w_t, ((0, 0), (0, C_out_pad - C_out), (0, C_in_pad - C_in)))

    # --- one-hot helpers (exact 0/1; DMA'd once, stay VMEM resident) --------
    lane_i = jnp.arange(Np)
    samp = lane_i // T_pad
    tau = lane_i % T_pad
    valid = (tau >= pad) & (tau < pad + T)
    samples = jnp.arange(B_blk)
    S = ((samp[:, None] == samples[None, :]) & valid[:, None]).astype(jnp.float32)
    ST = (samp[None, :] == samples[:, None]).astype(jnp.float32)

    cpg = C_out // G
    ch = jnp.arange(C_out_pad)
    grp = jnp.where(ch < C_out, ch // cpg, G)      # padded channels: no group
    gmap = (jnp.arange(G)[:, None] == grp[None, :]).astype(jnp.float32)
    zg = jnp.zeros_like(gmap)
    gmap2 = jnp.block([[gmap, zg], [zg, gmap]])                  # (2G, 2C)
    gmapt2 = gmap2.T                                             # (2C, 2G)

    params = jnp.zeros((C_out_pad, 4), jnp.float32)
    params = params.at[:C_out, 0].set(bias.astype(jnp.float32))
    params = params.at[:C_out, 1].set(gamma.astype(jnp.float32))
    params = params.at[:C_out, 2].set(beta.astype(jnp.float32))

    kernel = functools.partial(_conv_gn_mish_kernel, eps=float(eps), t_len=T,
                               n_groups=G, c_out=C_out, approx_math=approx_math)

    cp_kwargs = dict(dimension_semantics=("parallel",))
    vmem_est = vmem_bytes(B_blk)
    if vmem_est > (28 << 20):
        cp_kwargs["vmem_limit_bytes"] = int(min(vmem_est * 5 // 4, 64 << 20))

    out = pl.pallas_call(
        kernel,
        out_shape=jax.ShapeDtypeStruct((n_blk, C_out_pad, Np), out_dtype),
        grid_spec=pltpu.PrefetchScalarGridSpec(
            num_scalar_prefetch=0,
            grid=(n_blk,),
            in_specs=[
                pl.BlockSpec((1, C_in_pad, Np + 2 * pad), lambda i: (i, 0, 0)),
                pl.BlockSpec((K, C_out_pad, C_in_pad), lambda i: (0, 0, 0)),
                pl.BlockSpec((Np, B_blk), lambda i: (0, 0)),
                pl.BlockSpec((B_blk, Np), lambda i: (0, 0)),
                pl.BlockSpec((2 * G, 2 * C_out_pad), lambda i: (0, 0)),
                pl.BlockSpec((2 * C_out_pad, 2 * G), lambda i: (0, 0)),
                pl.BlockSpec((C_out_pad, 4), lambda i: (0, 0)),
            ],
            out_specs=pl.BlockSpec((1, C_out_pad, Np), lambda i: (i, 0, 0)),
        ),
        compiler_params=pltpu.CompilerParams(**cp_kwargs),
    )(x_h, w_t, S, ST, gmap2, gmapt2, params)

    # --- unfold batch from lanes; drop channel / halo padding ----------------
    # TODO(synk): this relayout is one extra HBM pass on the output; skip it
    # when the consumer can take the lane-folded (n_blk, C_out, B_blk*T_pad)
    # layout, or fuse it into the next op.
    out = out.reshape(n_blk, C_out_pad, B_blk, T_pad)
    out = jnp.transpose(out, (0, 2, 1, 3)).reshape(B, C_out_pad, T_pad)
    return out[:, :C_out, pad:pad + T]


def _reference(x, weight, bias, gamma, beta, n_groups, eps=1e-5):
    """Pure-JAX reference matching PyTorch Conv1d + GroupNorm + Mish."""
    K = weight.shape[-1]
    pad = K // 2
    y = jax.lax.conv_general_dilated(
        x, weight, window_strides=(1,), padding=[(pad, pad)],
        dimension_numbers=("NCH", "OIH", "NCH"))
    y = y + bias[None, :, None]
    B, C, T = y.shape
    yg = y.reshape(B, n_groups, C // n_groups, T)
    mean = yg.mean(axis=(2, 3), keepdims=True)
    var = ((yg - mean) ** 2).mean(axis=(2, 3), keepdims=True)
    yn = ((yg - mean) / jnp.sqrt(var + eps)).reshape(B, C, T)
    yn = yn * gamma[None, :, None] + beta[None, :, None]
    return yn * jnp.tanh(jax.nn.softplus(yn))


if __name__ == "__main__":
    # DiffusionConv1dBlock(inp_channels=8, out_channels=16, kernel_size=3,
    # n_groups=8) on an input of (batch=2, channels=8, seq=16).
    B, C_in, C_out, T, K, G = 2, 8, 16, 16, 3, 8

    key = jax.random.PRNGKey(0)
    k_x, k_w, k_b = jax.random.split(key, 3)
    x = jax.random.normal(k_x, (B, C_in, T), dtype=jnp.float32)
    fan_in = C_in * K
    bound = 1.0 / (fan_in ** 0.5)
    weight = jax.random.uniform(k_w, (C_out, C_in, K), jnp.float32, -bound, bound)
    bias = jax.random.uniform(k_b, (C_out,), jnp.float32, -bound, bound)
    gamma = jnp.ones((C_out,), jnp.float32)     # GroupNorm affine defaults
    beta = jnp.zeros((C_out,), jnp.float32)

    ref = _reference(x, weight, bias, gamma, beta, G)

    # Accuracy path: f32 MXU operands + exact divide (tight tolerance).
    out_f32 = diffusion_conv1d_block(x, weight, bias, gamma, beta, n_groups=G,
                                     mxu_dtype=jnp.float32, approx_math=False)
    out_f32 = jax.block_until_ready(out_f32)
    assert out_f32.shape == (B, C_out, T)
    assert jnp.allclose(out_f32, ref, atol=1e-4, rtol=1e-4), "f32 path mismatch"

    # Default performance path: bf16 MXU operands, approx reciprocal.
    out_bf16 = diffusion_conv1d_block(x, weight, bias, gamma, beta, n_groups=G)
    out_bf16 = jax.block_until_ready(out_bf16)
    assert out_bf16.shape == (B, C_out, T)
    assert jnp.allclose(out_bf16, ref, atol=5e-2, rtol=5e-2), "bf16 path mismatch"

    # Multi-step grid + channel-padding path (K=5, forced 2 grid steps).
    B2, C_in2, C_out2, T2, K2, G2 = 8, 12, 32, 16, 5, 8
    k_x2, k_w2, k_b2 = jax.random.split(jax.random.PRNGKey(1), 3)
    x2 = jax.random.normal(k_x2, (B2, C_in2, T2), dtype=jnp.float32)
    bound2 = 1.0 / ((C_in2 * K2) ** 0.5)
    w2 = jax.random.uniform(k_w2, (C_out2, C_in2, K2), jnp.float32,
                            -bound2, bound2)
    b2 = jax.random.uniform(k_b2, (C_out2,), jnp.float32, -bound2, bound2)
    g2 = jnp.ones((C_out2,), jnp.float32)
    be2 = jnp.zeros((C_out2,), jnp.float32)
    ref2 = _reference(x2, w2, b2, g2, be2, G2)
    out2 = diffusion_conv1d_block(x2, w2, b2, g2, be2, n_groups=G2,
                                  batch_block=4)
    out2 = jax.block_until_ready(out2)
    assert out2.shape == (B2, C_out2, T2)
    assert jnp.allclose(out2, ref2, atol=5e-2, rtol=5e-2), "grid path mismatch"

    print("KERNEL_OK")
</pallas_src>

<mosaic_0001>
module attributes {stable_mosaic.version = 11 : i64} {
  func.func @_conv_gn_mish_kernel(%arg0: i32, %arg1: memref<1x8x38xf32, #tpu.memory_space<vmem>>, %arg2: memref<3x16x8xf32, #tpu.memory_space<vmem>>, %arg3: memref<36x2xf32, #tpu.memory_space<vmem>>, %arg4: memref<2x36xf32, #tpu.memory_space<vmem>>, %arg5: memref<16x32xf32, #tpu.memory_space<vmem>>, %arg6: memref<32x16xf32, #tpu.memory_space<vmem>>, %arg7: memref<16x4xf32, #tpu.memory_space<vmem>>, %arg8: memref<1x16x36xf32, #tpu.memory_space<vmem>>) attributes {dimension_semantics = [#tpu.dimension_semantics<parallel>], iteration_bounds = array<i64: 1>, scalar_prefetch = 0 : i64, scratch_operands = 0 : i64, tpu.core_type = #tpu.core_type<tc>, window_params = [{transform_indices = @transform_0, window_bounds = array<i64: 1, 8, 38>}, {pipeline_mode = #tpu.pipeline_mode<synchronous>, transform_indices = @transform_1, window_bounds = array<i64: 3, 16, 8>}, {pipeline_mode = #tpu.pipeline_mode<synchronous>, transform_indices = @transform_2, window_bounds = array<i64: 36, 2>}, {pipeline_mode = #tpu.pipeline_mode<synchronous>, transform_indices = @transform_3, window_bounds = array<i64: 2, 36>}, {pipeline_mode = #tpu.pipeline_mode<synchronous>, transform_indices = @transform_4, window_bounds = array<i64: 16, 32>}, {pipeline_mode = #tpu.pipeline_mode<synchronous>, transform_indices = @transform_5, window_bounds = array<i64: 32, 16>}, {pipeline_mode = #tpu.pipeline_mode<synchronous>, transform_indices = @transform_6, window_bounds = array<i64: 16, 4>}, {transform_indices = @transform_7, window_bounds = array<i64: 1, 16, 36>}]} {
    %c0 = arith.constant 0 : index
    %c0_0 = arith.constant 0 : index
    %c0_1 = arith.constant 0 : index
    %0 = vector.load %arg2[%c0, %c0_0, %c0_1] : memref<3x16x8xf32, #tpu.memory_space<vmem>>, vector<1x16x8xf32>
    %1 = vector.shape_cast %0 : vector<1x16x8xf32> to vector<16x8xf32>
    %c0_2 = arith.constant 0 : index
    %c0_3 = arith.constant 0 : index
    %c0_4 = arith.constant 0 : index
    %2 = vector.load %arg1[%c0_2, %c0_3, %c0_4] : memref<1x8x38xf32, #tpu.memory_space<vmem>>, vector<1x8x36xf32>
    %3 = vector.shape_cast %2 : vector<1x8x36xf32> to vector<8x36xf32>
    %cst = arith.constant dense<0.000000e+00> : vector<16x36xf32>
    %4 = tpu.matmul %1, %3, %cst {dimension_numbers = #tpu.dot_dimension_numbers<[1], [0], [0], [1], [0, 0, 1, 1], [], []>} : vector<16x8xf32>, vector<8x36xf32>, vector<16x36xf32> -> vector<16x36xf32>
    %c1 = arith.constant 1 : index
    %c0_5 = arith.constant 0 : index
    %c0_6 = arith.constant 0 : index
    %5 = vector.load %arg2[%c1, %c0_5, %c0_6] : memref<3x16x8xf32, #tpu.memory_space<vmem>>, vector<1x16x8xf32>
    %6 = vector.shape_cast %5 : vector<1x16x8xf32> to vector<16x8xf32>
    %c0_7 = arith.constant 0 : index
    %c0_8 = arith.constant 0 : index
    %c1_9 = arith.constant 1 : index
    %7 = vector.load %arg1[%c0_7, %c0_8, %c1_9] : memref<1x8x38xf32, #tpu.memory_space<vmem>>, vector<1x8x36xf32>
    %8 = vector.shape_cast %7 : vector<1x8x36xf32> to vector<8x36xf32>
    %cst_10 = arith.constant dense<0.000000e+00> : vector<16x36xf32>
    %9 = tpu.matmul %6, %8, %cst_10 {dimension_numbers = #tpu.dot_dimension_numbers<[1], [0], [0], [1], [0, 0, 1, 1], [], []>} : vector<16x8xf32>, vector<8x36xf32>, vector<16x36xf32> -> vector<16x36xf32>
    %10 = arith.addf %4, %9 : vector<16x36xf32>
    %c2 = arith.constant 2 : index
    %c0_11 = arith.constant 0 : index
    %c0_12 = arith.constant 0 : index
    %11 = vector.load %arg2[%c2, %c0_11, %c0_12] : memref<3x16x8xf32, #tpu.memory_space<vmem>>, vector<1x16x8xf32>
    %12 = vector.shape_cast %11 : vector<1x16x8xf32> to vector<16x8xf32>
    %c0_13 = arith.constant 0 : index
    %c0_14 = arith.constant 0 : index
    %c2_15 = arith.constant 2 : index
    %13 = vector.load %arg1[%c0_13, %c0_14, %c2_15] : memref<1x8x38xf32, #tpu.memory_space<vmem>>, vector<1x8x36xf32>
    %14 = vector.shape_cast %13 : vector<1x8x36xf32> to vector<8x36xf32>
    %cst_16 = arith.constant dense<0.000000e+00> : vector<16x36xf32>
    %15 = tpu.matmul %12, %14, %cst_16 {dimension_numbers = #tpu.dot_dimension_numbers<[1], [0], [0], [1], [0, 0, 1, 1], [], []>} : vector<16x8xf32>, vector<8x36xf32>, vector<16x36xf32> -> vector<16x36xf32>
    %16 = arith.addf %10, %15 : vector<16x36xf32>
    %c0_17 = arith.constant 0 : index
    %c0_18 = arith.constant 0 : index
    %17 = vector.load %arg7[%c0_17, %c0_18] : memref<16x4xf32, #tpu.memory_space<vmem>>, vector<16x1xf32>
    %c0_19 = arith.constant 0 : index
    %c1_20 = arith.constant 1 : index
    %18 = vector.load %arg7[%c0_19, %c1_20] : memref<16x4xf32, #tpu.memory_space<vmem>>, vector<16x1xf32>
    %c0_21 = arith.constant 0 : index
    %c2_22 = arith.constant 2 : index
    %19 = vector.load %arg7[%c0_21, %c2_22] : memref<16x4xf32, #tpu.memory_space<vmem>>, vector<16x1xf32>
    %20 = arith.mulf %16, %16 : vector<16x36xf32>
    %21 = tpu.concatenate %16, %20 in 0 : vector<16x36xf32>, vector<16x36xf32> -> vector<32x36xf32>
    %c0_23 = arith.constant 0 : index
    %c0_24 = arith.constant 0 : index
    %22 = vector.load %arg3[%c0_23, %c0_24] : memref<36x2xf32, #tpu.memory_space<vmem>>, vector<36x2xf32>
    %cst_25 = arith.constant dense<0.000000e+00> : vector<32x2xf32>
    %23 = tpu.matmul %21, %22, %cst_25 {dimension_numbers = #tpu.dot_dimension_numbers<[1], [0], [0], [1], [0, 0, 1, 1], [], []>} : vector<32x36xf32>, vector<36x2xf32>, vector<32x2xf32> -> vector<32x2xf32>
    %24 = vector.extract_strided_slice %23 {offsets = [0, 0], sizes = [16, 2], strides = [1, 1]} : vector<32x2xf32> to vector<16x2xf32>
    %25 = vector.extract_strided_slice %23 {offsets = [16, 0], sizes = [16, 2], strides = [1, 1]} : vector<32x2xf32> to vector<16x2xf32>
    %cst_26 = arith.constant 1.600000e+01 : f32
    %26 = vector.broadcast %cst_26 : f32 to vector<16x1xf32>
    %27 = arith.mulf %17, %26 : vector<16x1xf32>
    %28 = vector.broadcast %27 : vector<16x1xf32> to vector<16x2xf32>
    %29 = arith.addf %24, %28 : vector<16x2xf32>
    %cst_27 = arith.constant 2.000000e+00 : f32
    %30 = vector.broadcast %cst_27 : f32 to vector<16x1xf32>
    %31 = arith.mulf %30, %17 : vector<16x1xf32>
    %32 = vector.broadcast %31 : vector<16x1xf32> to vector<16x2xf32>
    %33 = arith.mulf %32, %24 : vector<16x2xf32>
    %34 = arith.addf %25, %33 : vector<16x2xf32>
    %35 = arith.mulf %17, %17 : vector<16x1xf32>
    %cst_28 = arith.constant 1.600000e+01 : f32
    %36 = vector.broadcast %cst_28 : f32 to vector<16x1xf32>
    %37 = arith.mulf %35, %36 : vector<16x1xf32>
    %38 = vector.broadcast %37 : vector<16x1xf32> to vector<16x2xf32>
    %39 = arith.addf %34, %38 : vector<16x2xf32>
    %c0_29 = arith.constant 0 : index
    %c0_30 = arith.constant 0 : index
    %40 = vector.load %arg5[%c0_29, %c0_30] : memref<16x32xf32, #tpu.memory_space<vmem>>, vector<16x32xf32>
    %41 = tpu.concatenate %29, %39 in 0 : vector<16x2xf32>, vector<16x2xf32> -> vector<32x2xf32>
    %cst_31 = arith.constant dense<0.000000e+00> : vector<16x2xf32>
    %42 = tpu.matmul %40, %41, %cst_31 {dimension_numbers = #tpu.dot_dimension_numbers<[1], [0], [0], [1], [0, 0, 1, 1], [], []>} : vector<16x32xf32>, vector<32x2xf32>, vector<16x2xf32> -> vector<16x2xf32>
    %43 = vector.extract_strided_slice %42 {offsets = [0, 0], sizes = [8, 2], strides = [1, 1]} : vector<16x2xf32> to vector<8x2xf32>
    %cst_32 = arith.constant 3.125000e-02 : f32
    %44 = vector.broadcast %cst_32 : f32 to vector<8x2xf32>
    %45 = arith.mulf %43, %44 : vector<8x2xf32>
    %46 = vector.extract_strided_slice %42 {offsets = [8, 0], sizes = [8, 2], strides = [1, 1]} : vector<16x2xf32> to vector<8x2xf32>
    %cst_33 = arith.constant 3.125000e-02 : f32
    %47 = vector.broadcast %cst_33 : f32 to vector<8x2xf32>
    %48 = arith.mulf %46, %47 : vector<8x2xf32>
    %49 = arith.mulf %45, %45 : vector<8x2xf32>
    %50 = arith.subf %48, %49 : vector<8x2xf32>
    %cst_34 = arith.constant 0.000000e+00 : f32
    %51 = vector.broadcast %cst_34 : f32 to vector<8x2xf32>
    %52 = arith.maximumf %50, %51 : vector<8x2xf32>
    %cst_35 = arith.constant 9.99999974E-6 : f32
    %53 = vector.broadcast %cst_35 : f32 to vector<8x2xf32>
    %54 = arith.addf %52, %53 : vector<8x2xf32>
    %55 = math.rsqrt %54 : vector<8x2xf32>
    %c0_36 = arith.constant 0 : index
    %c0_37 = arith.constant 0 : index
    %56 = vector.load %arg6[%c0_36, %c0_37] : memref<32x16xf32, #tpu.memory_space<vmem>>, vector<32x16xf32>
    %57 = tpu.concatenate %45, %55 in 0 : vector<8x2xf32>, vector<8x2xf32> -> vector<16x2xf32>
    %cst_38 = arith.constant dense<0.000000e+00> : vector<32x2xf32>
    %58 = tpu.matmul %56, %57, %cst_38 {dimension_numbers = #tpu.dot_dimension_numbers<[1], [0], [0], [1], [0, 0, 1, 1], [], []>} : vector<32x16xf32>, vector<16x2xf32>, vector<32x2xf32> -> vector<32x2xf32>
    %59 = vector.extract_strided_slice %58 {offsets = [16, 0], sizes = [16, 2], strides = [1, 1]} : vector<32x2xf32> to vector<16x2xf32>
    %60 = vector.broadcast %18 : vector<16x1xf32> to vector<16x2xf32>
    %61 = arith.mulf %60, %59 : vector<16x2xf32>
    %62 = vector.extract_strided_slice %58 {offsets = [0, 0], sizes = [16, 2], strides = [1, 1]} : vector<32x2xf32> to vector<16x2xf32>
    %63 = vector.broadcast %17 : vector<16x1xf32> to vector<16x2xf32>
    %64 = arith.subf %63, %62 : vector<16x2xf32>
    %65 = arith.mulf %64, %61 : vector<16x2xf32>
    %66 = vector.broadcast %19 : vector<16x1xf32> to vector<16x2xf32>
    %67 = arith.addf %66, %65 : vector<16x2xf32>
    %68 = tpu.concatenate %61, %67 in 0 : vector<16x2xf32>, vector<16x2xf32> -> vector<32x2xf32>
    %c0_39 = arith.constant 0 : index
    %c0_40 = arith.constant 0 : index
    %69 = vector.load %arg4[%c0_39, %c0_40] : memref<2x36xf32, #tpu.memory_space<vmem>>, vector<2x36xf32>
    %cst_41 = arith.constant dense<0.000000e+00> : vector<32x36xf32>
    %70 = tpu.matmul %68, %69, %cst_41 {dimension_numbers = #tpu.dot_dimension_numbers<[1], [0], [0], [1], [0, 0, 1, 1], [], []>} : vector<32x2xf32>, vector<2x36xf32>, vector<32x36xf32> -> vector<32x36xf32>
    %71 = vector.extract_strided_slice %70 {offsets = [0, 0], sizes = [16, 36], strides = [1, 1]} : vector<32x36xf32> to vector<16x36xf32>
    %72 = arith.mulf %16, %71 : vector<16x36xf32>
    %73 = vector.extract_strided_slice %70 {offsets = [16, 0], sizes = [16, 36], strides = [1, 1]} : vector<32x36xf32> to vector<16x36xf32>
    %74 = arith.addf %72, %73 : vector<16x36xf32>
    %cst_42 = arith.constant 2.000000e+01 : f32
    %75 = vector.broadcast %cst_42 : f32 to vector<16x36xf32>
    %76 = arith.minimumf %74, %75 : vector<16x36xf32>
    %77 = math.exp %76 : vector<16x36xf32>
    %cst_43 = arith.constant 2.000000e+00 : f32
    %78 = vector.broadcast %cst_43 : f32 to vector<16x36xf32>
    %79 = arith.addf %77, %78 : vector<16x36xf32>
    %80 = arith.mulf %77, %79 : vector<16x36xf32>
    %cst_44 = arith.constant 2.000000e+00 : f32
    %81 = vector.broadcast %cst_44 : f32 to vector<16x36xf32>
    %82 = arith.addf %80, %81 : vector<16x36xf32>
    %83 = arith.divf %80, %82 : vector<16x36xf32>
    %84 = arith.mulf %74, %83 : vector<16x36xf32>
    %c0_45 = arith.constant 0 : index
    %c0_46 = arith.constant 0 : index
    %c0_47 = arith.constant 0 : index
    %85 = vector.load %arg8[%c0_45, %c0_46, %c0_47] : memref<1x16x36xf32, #tpu.memory_space<vmem>>, vector<1x16x36xf32>
    %86 = vector.shape_cast %85 : vector<1x16x36xf32> to vector<16x36xf32>
    %87 = vector.shape_cast %84 : vector<16x36xf32> to vector<1x16x36xf32>
    tpu.vector_store %arg8[%c0_45, %c0_46, %c0_47], %87 {strides = array<i32>} : memref<1x16x36xf32, #tpu.memory_space<vmem>>, vector<1x16x36xf32>,
    return
  }
  func.func @transform_0(%arg0: i32) -> (i32, i32, i32) {
    %c0_i32 = arith.constant 0 : i32
    %c0_i32_0 = arith.constant 0 : i32
    %c0_i32_1 = arith.constant 0 : i32
    return %arg0, %c0_i32, %c0_i32_0 : i32, i32, i32
  }
  func.func @transform_1(%arg0: i32) -> (i32, i32, i32) {
    %c0_i32 = arith.constant 0 : i32
    %c0_i32_0 = arith.constant 0 : i32
    %c0_i32_1 = arith.constant 0 : i32
    %c0_i32_2 = arith.constant 0 : i32
    return %c0_i32, %c0_i32_0, %c0_i32_1 : i32, i32, i32
  }
  func.func @transform_2(%arg0: i32) -> (i32, i32) {
    %c0_i32 = arith.constant 0 : i32
    %c0_i32_0 = arith.constant 0 : i32
    %c0_i32_1 = arith.constant 0 : i32
    return %c0_i32, %c0_i32_0 : i32, i32
  }
  func.func @transform_3(%arg0: i32) -> (i32, i32) {
    %c0_i32 = arith.constant 0 : i32
    %c0_i32_0 = arith.constant 0 : i32
    %c0_i32_1 = arith.constant 0 : i32
    return %c0_i32, %c0_i32_0 : i32, i32
  }
  func.func @transform_4(%arg0: i32) -> (i32, i32) {
    %c0_i32 = arith.constant 0 : i32
    %c0_i32_0 = arith.constant 0 : i32
    %c0_i32_1 = arith.constant 0 : i32
    return %c0_i32, %c0_i32_0 : i32, i32
  }
  func.func @transform_5(%arg0: i32) -> (i32, i32) {
    %c0_i32 = arith.constant 0 : i32
    %c0_i32_0 = arith.constant 0 : i32
    %c0_i32_1 = arith.constant 0 : i32
    return %c0_i32, %c0_i32_0 : i32, i32
  }
  func.func @transform_6(%arg0: i32) -> (i32, i32) {
    %c0_i32 = arith.constant 0 : i32
    %c0_i32_0 = arith.constant 0 : i32
    %c0_i32_1 = arith.constant 0 : i32
    return %c0_i32, %c0_i32_0 : i32, i32
  }
  func.func @transform_7(%arg0: i32) -> (i32, i32, i32) {
    %c0_i32 = arith.constant 0 : i32
    %c0_i32_0 = arith.constant 0 : i32
    %c0_i32_1 = arith.constant 0 : i32
    return %arg0, %c0_i32, %c0_i32_0 : i32, i32, i32
  }
}

</mosaic_0001>

<bundles_post_ra>
// kernel: tpu_custom_call.1
= control target key start
LH: loop header
LB: loop body
LE: loop exit
PB: predicated region body
PF: predicated region fallthrough
CT: control target
= control target key end

     0   :  { %vm37_vm0 = vcmask 64512   ;;  %s1008_s30 = smov 127   ;;  %s1179_s0 = inlined_call_operand.vmem [shape: f32[1,8,38], index: 0, kind: input, shape index: {}]   ;;  %s1180_s1 = inlined_call_operand.vmem [shape: f32[3,16,8], index: 1, kind: input, shape index: {}]   ;;  %s1181_s2 = inlined_call_operand.vmem [shape: f32[36,2], index: 2, kind: input, shape index: {}]   ;;  %s1182_s3 = inlined_call_operand.vmem [shape: f32[2,36], index: 3, kind: input, shape index: {}]   ;;  %s1183_s4 = inlined_call_operand.vmem [shape: f32[16,32], index: 4, kind: input, shape index: {}]   ;;  %s1184_s5 = inlined_call_operand.vmem [shape: f32[32,16], index: 5, kind: input, shape index: {}]   ;;  %s1185_s6 = inlined_call_operand.vmem [shape: f32[16,4], index: 6, kind: input, shape index: {}]   ;;  %s1186_s7 = inlined_call_operand.hbm [shape: f32[1,16,36], index: 7, kind: output, shape index: {}]  }
   0x1   :  { %v29_v0 = vld [vmem:[%s1179_s0] sm:$0xff]  ;;  %v28_v2 = vld [vmem:[%s1180_s1 + $0x8] sm:$0xff]  ;;  %v816_v3 = vld [vmem:[%s1180_s1 + $0x10] sm:$0xff] }
   0x2   :  { %v27_v1 = vld [vmem:[%s1180_s1] sm:$0xff]  ;;  %34 = vrot.lane.b32.xlu0 %v29_v0, %s1008_s30  ;;  %882 = vmatprep.subr.mxu0 %v29_v0 }
   0x3   :  { %v822_v4 = vld [vmem:[%s1180_s1 + $0x20] sm:$0xff]  ;;  %883 = vmatpush3.msra.mxu0 %v29_v0  ;;  %884 = vmatprep.mubr.msk.f32.mxu0 %vm37_vm0, %v27_v1 }
   0x4   :  { %885 = vmatmul.mubr.msk.f32.vlgmr.msra.gmra.mrb[0].mxu0 %vm37_vm0, %v28_v2  ;;  %879 = vmatprep.mubr.msk.f32.mxu1 %vm37_vm0, %v816_v3 }
   0x5   :  { %12 = vsyncpa [#allocation3], 0  ;;  %889 = vmatprep.mubr.msk.f32.mxu0 %vm37_vm0, %v822_v4  ;;  %s1009_s0 = smov 126   ;;  %v293_v5 = vld [vmem:[%s1181_s2] sm:$0xff]  ;;  %v294_v6 = vld [vmem:[%s1181_s2 + $0x8] sm:$0xff]  ;;  %vm311_vm1 = vcmask 1043456  }
   0x6   :  { %203 = vrot.lane.b32.xlu0 %v29_v0, %s1009_s0  ;;  %v295_v7 = vld [vmem:[%s1181_s2 + $0x10] sm:$0xff]  ;;  %v296_v8 = vld [vmem:[%s1181_s2 + $0x18] sm:$0xff]  ;;  %v937_v9 = vpack.c.bf16 %v294_v6, %v293_v5  ;;  %v823_v14 = vld [vmem:[%s1180_s1 + $0x28] sm:$0xff]  ;;  %v1010_v18 = vmov 0   ;;  %vm298_vm2 = vcmask 293888   ;;  %vm448_vm3 = vcmask 261120  }
   0x7   :  { %v817_v11 = vld [vmem:[%s1180_s1 + $0x18] sm:$0xff]  ;;  %v941_v12 = vpack.c.bf16 %v296_v8, %v295_v7  ;;  %v297_v15 = vld [vmem:[%s1181_s2 + $0x20] sm:$0xf]  ;;  %v1106_v17 = vld [vmem:[%s1185_s6 + $0x8] sm:$0xff]  ;;  %969 = vset.pattern.permute.xlu1 %v1010_v18  ;;  %970 = vset.pattern.permute.xlu0 %v1010_v18  ;;  %vm541_vm4 = vcmask 130048   ;;  %v1011_v58 = vmov 1  }
   0x8   :  { %v1101_v16 = vld [vmem:[%s1185_s6] sm:$0xff]  ;;  %v431_v21 = vmul.f32 %v1106_v17, %v1106_v17  ;;  %v401_v22 = vmul.f32 16.0, %v1106_v17  ;;  %v415_v24 = vmul.f32 2.0, %v1106_v17  ;;  %v447_v56 = vld [vmem:[%s1183_s4 + $0x8] sm:$0xff]  ;;  %v1012_v59 = vmov 2   ;;  %v539_v7 = vld [vmem:[%s1184_s5 + $0x10] sm:$0xff] }
   0x9   :  { %v400_v19 = vmul.f32 16.0, %v1101_v16  ;;  %v414_v20 = vmul.f32 2.0, %v1101_v16  ;;  %v430_v25 = vmul.f32 %v1101_v16, %v1101_v16  ;;  %v446_v35 = vld [vmem:[%s1183_s4] sm:$0xff]  ;;  %v538_v6 = vld [vmem:[%s1184_s5 + $0x8] sm:$0xff]  ;;  %v540_v8 = vld [vmem:[%s1184_s5 + $0x18] sm:$0xff]  ;;  %vm687_vm5 = vcmask 1041408  }
   0xa   :  { %v433_v23 = vmul.f32 16.0, %v431_v21  ;;  %v537_v57 = vld [vmem:[%s1184_s5] sm:$0xff]  ;;  %vm674_vm6 = vcmask 15360  }
   0xb   :  { %404 = vperm.xlu1 %969, %v400_v19   ;;  %418 = vperm.xlu0 %970, %v414_v20   ;;  %v432_v26 = vmul.f32 16.0, %v430_v25 }
   0xf   :  { %409 = vperm.xlu1 %969, %v401_v22   ;;  %441 = vperm.xlu0 %970, %v433_v23  }
  0x13   :  { %423 = vperm.xlu1 %969, %v415_v24   ;;  %652 = vperm.xlu0 %970, %v1101_v16  }
  0x17   :  { %436 = vperm.xlu1 %969, %v432_v26   ;;  %656 = vperm.xlu0 %970, %v1106_v17  }
  0x1b   :  { %971 = vset.pattern.permute.xlu1 %v1011_v58  ;;  %973 = vset.pattern.permute.xlu0 %v1012_v59 }
  0x1c   :  { %641 = vperm.xlu1 %971, %v1101_v16   ;;  %668 = vperm.xlu0 %973, %v1106_v17  }
  0x20   :  { %646 = vperm.xlu1 %971, %v1106_v17  }
  0x24   :  { %972 = vset.pattern.permute.xlu1 %v1012_v59 }
  0x25   :  { %664 = vperm.xlu1 %972, %v1101_v16  }
  0x74   :  { %v35_v10 = vpop.permute.xlu0 %34 }
  0x75   :  { %877 = vmatprep.subr.mxu1 %v35_v10 }
  0x76   :  { %878 = vmatpush3.msra.mxu1 %v35_v10 }
  0x77   :  { %880 = vmatmul.mubr.msk.f32.vlgmr.msra.gmra.mrb[0].mxu1 %vm37_vm0, %v817_v11  ;;  %938 = vmatprep.subr.bf16.mxu1 %v937_v9 }
  0x78   :  { %v204_v13 = vpop.permute.xlu0 %203  ;;  %940 = vmatpush3.bf16.msra.mxu1 %v937_v9  ;;  %v673_v9 = vld [vmem:[%s1182_s3] sm:$0x3]  ;;  %s1013_s3 = smov [#allocation2]  }
  0x79   :  { %887 = vmatprep.subr.mxu0 %v204_v13  ;;  %942 = vmatprep.subr.bf16.mxu1 %v941_v12  ;;  %s805_s5 = sshll.u32 %s1013_s3, 4  ;;  %s806_s5 = int_to_ptr.vmem [resolvable:$true] %s805_s5 }
  0x7a   :  { %888 = vmatpush3.msra.mxu0 %v204_v13  ;;  %s984_s16 = scalar_lea.vmem %s806_s5, 256  ;;  %p989_p1 = scmp.lt.s32.totalorder %s806_s5, %s806_s5 }
  0x7b   :  { %890 = vmatmul.mubr.msk.f32.vlgmr.msra.gmra.mrb[0].mxu0 %vm37_vm0, %v823_v14  ;;  %p985_p0 = scmp.ne.s32.totalorder %s806_s5, %s984_s16  ;;  %p990_p2 = scmp.lt.s32.totalorder %s984_s16, %s984_s16 }
  0x7c   :  { %944 = vmatpush3.bf16.msra.mxu1 %v941_v12  ;;  %916 = vmatprep.mubr.msk.f32.mxu0 %vm448_vm3, %v446_v35 }
  0x7d   :  { %900 = vmatprep.subr.msk.mxu1 %vm311_vm1, %v297_v15  ;;  %p991_p3 = por %p990_p2, %p989_p1 }
  0x7f   :  { %p992_p4 = pnand %p991_p3, %p985_p0 }
  0x80   :  { %901 = vmatpush3.msk.msra.mxu1 %vm311_vm1, %v297_v15 }
  0x8a   :  { %v405_v36 = vpop.permute.xlu1 %404  ;;  %v419_v38 = vpop.permute.xlu0 %418 }
  0x8e   :  { %v410_v37 = vpop.permute.xlu1 %409  ;;  %v442_v50 = vpop.permute.xlu0 %441 }
  0x92   :  { %v424_v40 = vpop.permute.xlu1 %423  ;;  %v653_v11 = vpop.permute.xlu0 %652 }
  0x96   :  { %v437_v52 = vpop.permute.xlu1 %436  ;;  %v657_v15 = vpop.permute.xlu0 %656 }
  0x9b   :  { %v642_v10 = vpop.permute.xlu1 %641  ;;  %v669_v24 = vpop.permute.xlu0 %668 }
  0x9f   :  { %v647_v14 = vpop.permute.xlu1 %646 }
  0xa4   :  { %v665_v23 = vpop.permute.xlu1 %664 }
 0x14a   :  { %v881_v27 = vpop.f32.mrb[0].mxu1 }
 0x14b   :  { %v110_v28 = vpop.f32.mrb[1].mxu1 }
 0x14e   :  { %v891_v29 = vpop.f32.mrb[0].mxu0 }
 0x14f   :  { %v1118_v30 = vadd.f32 %v891_v29, %v881_v27  ;;  %v278_v31 = vpop.f32.mrb[1].mxu0 }
 0x150   :  { %v1120_v32 = vadd.f32 %v278_v31, %v110_v28 }
 0x151   :  { %v292_v34 = vmul.f32 %v1118_v30, %v1118_v30 }
 0x152   :  { %v291_v33 = vmul.f32 %v1120_v32, %v1120_v32  ;;  %902 = vmatprep.mubr.msk.f32.mxu1 %vm298_vm2, %v1120_v32 }
 0x153   :  { %903 = vmatmul.mubr.msk.f32.vlgmr.msra.gmra.mrb[2].mxu1 %vm298_vm2, %v1118_v30 }
 0x154   :  { %905 = vmatprep.mubr.msk.f32.mxu1 %vm298_vm2, %v291_v33 }
 0x157   :  { %906 = vmatmul.mubr.msk.f32.gmra.mrb[4].mxu1 %vm298_vm2, %v292_v34 }
 0x158   :  { %923 = vmatprep.mubr.msk.f32.mxu1 %vm541_vm4, %v537_v57 }
 0x226   :  { %v904_v39 = vpop.f32.mrb[2].mxu1 }
 0x227   :  { %v413_v41 = vadd.f32 %v904_v39, %v410_v37  ;;  %v381_v42 = vpop.f32.mrb[3].mxu1  ;;  %v427_v44 = vmul.f32 %v904_v39, %v424_v40 }
 0x228   :  { %v412_v43 = vadd.f32 %v405_v36, %v381_v42  ;;  %v426_v45 = vmul.f32 %v419_v38, %v381_v42 }
 0x22a   :  { %v945_v46 = vpack.c.bf16 %v413_v41, %v412_v43  ;;  %v907_v47 = vpop.f32.mrb[4].mxu1 }
 0x22b   :  { %v429_v48 = vadd.f32 %v907_v47, %v427_v44  ;;  %v391_v49 = vpop.f32.mrb[5].mxu1 }
 0x22c   :  { %v428_v51 = vadd.f32 %v426_v45, %v391_v49  ;;  %946 = vmatprep.subr.bf16.mxu0 %v945_v46 }
 0x22d   :  { %v445_v53 = vadd.f32 %v442_v50, %v429_v48  ;;  %948 = vmatpush3.bf16.msra.mxu0 %v945_v46 }
 0x22e   :  { %v444_v54 = vadd.f32 %v437_v52, %v428_v51 }
 0x230   :  { %v949_v55 = vpack.c.bf16 %v445_v53, %v444_v54 }
 0x232   :  { %950 = vmatprep.subr.bf16.mxu0 %v949_v55 }
 0x233   :  { %952 = vmatpush3.bf16.msra.mxu0 %v949_v55 }
 0x234   :  { %929 = vmatprep.subr.msk.mxu0 %vm687_vm5, %v673_v9 }
 0x236   :  { %917 = vmatmul.mubr.msk.f32.vlgmr.msra.gmra.mrb[2].mxu0 %vm448_vm3, %v447_v56 }
 0x237   :  { %930 = vmatpush3.msk.msra.mxu0 %vm687_vm5, %v673_v9 }
 0x309   :  { %v918_v60 = vpop.f32.mrb[2].mxu0 }
 0x30a   :  { %v521_v61 = vpop.f32.mrb[3].mxu0  ;;  %v531_v63 = vmul.f32 0.03125, %v918_v60 }
 0x30b   :  { %v530_v62 = vmul.f32 0.03125, %v521_v61 }
 0x30d   :  { %v532_v0 = vmul.f32 %v530_v62, %v530_v62 }
 0x30f   :  { %v533_v1 = vsub.f32 %v531_v63, %v532_v0 }
 0x311   :  { %v534_v2 = vmax.f32 %v533_v1, 0.0 }
 0x313   :  { %v535_v3 = vadd.f32 1e-05, %v534_v2 }
 0x315   :  { %974 = vrsqrt.f32 %v535_v3 }
 0x31f   :  { %v975_v4 = vpop.eup %974 }
 0x320   :  { %v953_v5 = vpack.c.bf16 %v975_v4, %v530_v62 }
 0x322   :  { %954 = vmatprep.subr.bf16.mxu1 %v953_v5 }
 0x323   :  { %956 = vmatpush3.bf16.msra.mxu1 %v953_v5 }
 0x326   :  { %924 = vmatmul.mubr.msk.f32.vlgmr.msra.gmra.mrb[6].mxu1 %vm541_vm4, %v538_v6 }
 0x327   :  { %926 = vmatprep.mubr.msk.f32.mxu1 %vm541_vm4, %v539_v7 }
 0x32a   :  { %927 = vmatmul.mubr.msk.f32.gmra.mrb[8].mxu1 %vm541_vm4, %v540_v8 }
 0x3f9   :  { %v925_v12 = vpop.f32.mrb[6].mxu1 }
 0x3fa   :  { %v620_v13 = vpop.f32.mrb[7].mxu1  ;;  %v660_v17 = vsub.f32 %v657_v15, %v925_v12 }
 0x3fb   :  { %v659_v20 = vsub.f32 %v653_v11, %v620_v13 }
 0x3fd   :  { %v928_v16 = vpop.f32.mrb[8].mxu1 }
 0x3fe   :  { %v650_v18 = vmul.f32 %v928_v16, %v647_v14  ;;  %v630_v19 = vpop.f32.mrb[9].mxu1 }
 0x3ff   :  { %v649_v21 = vmul.f32 %v642_v10, %v630_v19 }
 0x400   :  { %v662_v22 = vmul.f32 %v660_v17, %v650_v18 }
 0x401   :  { %931 = vmatprep.mubr.msk.f32.mxu0 %vm674_vm6, %v649_v21  ;;  %v661_v25 = vmul.f32 %v659_v20, %v649_v21 }
 0x402   :  { %932 = vmatmul.mubr.msk.f32.vlgmr.msra.gmra.mrb[4].mxu0 %vm674_vm6, %v650_v18  ;;  %v672_v27 = vadd.f32 %v669_v24, %v662_v22 }
 0x403   :  { %v671_v26 = vadd.f32 %v665_v23, %v661_v25 }
 0x405   :  { %934 = vmatprep.mubr.msk.f32.mxu0 %vm674_vm6, %v671_v26 }
 0x406   :  { %935 = vmatmul.mubr.msk.f32.gmra.mrb[6].mxu0 %vm674_vm6, %v672_v27 }
 0x4d5   :  { %v933_v28 = vpop.f32.mrb[4].mxu0 }
 0x4d6   :  { %v757_v29 = vpop.f32.mrb[5].mxu0  ;;  %v777_v31 = vmul.f32 %v1118_v30, %v933_v28 }
 0x4d7   :  { %v776_v33 = vmul.f32 %v1120_v32, %v757_v29 }
 0x4d9   :  { %v936_v34 = vpop.f32.mrb[6].mxu0 }
 0x4da   :  { %v779_v35 = vadd.f32 %v936_v34, %v777_v31  ;;  %v767_v36 = vpop.f32.mrb[7].mxu0 }
 0x4db   :  { %v778_v37 = vadd.f32 %v776_v33, %v767_v36 }
 0x4dc   :  { %v781_v38 = vmin.f32 %v779_v35, 20.0 }
 0x4dd   :  { %v780_v39 = vmin.f32 %v778_v37, 20.0 }
 0x4de   :  { %v784_v40 = vmul.f32 1.442695, %v781_v38 }
 0x4df   :  { %v782_v41 = vmul.f32 1.442695, %v780_v39 }
 0x4e0   :  { %976 = vpow2.f32 %v784_v40 }
 0x4e1   :  { %978 = vpow2.f32 %v782_v41 }
 0x4ea   :  { %v977_v42 = vpop.eup %976 }
 0x4eb   :  { %v979_v43 = vpop.eup %978  ;;  %v787_v44 = vadd.f32 2.0, %v977_v42 }
 0x4ec   :  { %v786_v45 = vadd.f32 2.0, %v979_v43 }
 0x4ed   :  { %v789_v46 = vmul.f32 %v977_v42, %v787_v44 }
 0x4ee   :  { %v788_v47 = vmul.f32 %v979_v43, %v786_v45 }
 0x4ef   :  { %v791_v48 = vadd.f32 2.0, %v789_v46 }
 0x4f0   :  { %v790_v30 = vadd.f32 2.0, %v788_v47 }
 0x4f1   :  { %980 = vrcp.f32 %v791_v48 }
 0x4f2   :  { %982 = vrcp.f32 %v790_v30 }
 0x4fb   :  { %v981_v32 = vpop.eup %980 }
 0x4fc   :  { %v983_v49 = vpop.eup %982  ;;  %v795_v50 = vmul.f32 %v981_v32, %v789_v46 }
 0x4fd   :  { %v793_v51 = vmul.f32 %v983_v49, %v788_v47 }
 0x4fe   :  { %v797_v52 = vmul.f32 %v795_v50, %v779_v35 }
 0x4ff   :  { %v796_v53 = vmul.f32 %v793_v51, %v778_v37 }
 0x500   :  { %799 = vst.msk [vmem:[#allocation2 + $0x8] sm:$0xff] %vm298_vm2, %v797_v52 }
 0x501   :  { %798 = vst.msk [vmem:[#allocation2] sm:$0xff] %vm298_vm2, %v796_v53 }
 0x502   :  { %995 = shalt.err (!%p992_p4)
}
 0x503   :  { %s996_s19 = scalar_lea.hbm %s1186_s7, 256 }
 0x504   :  { %p997_p5 = scmp.ne.s32.totalorder %s1186_s7, %s996_s19  ;;  %p1000_p6 = scmp.lt.u32.totalorder %s996_s19, %s1186_s7 }
 0x506   :  { %p1002_p7 = pnand %p1000_p6, %p997_p5 }
 0x508   :  { %1005 = shalt.err (!%p1002_p7)
}
 0x509   :  { %s1014_s24 = smov 128   ;;  %s1015_s25 = smov 8  }
 0x50a   :  { %811 = dma.vmem_to_hbm [thread:$0]  %s806_s5, 256, %s1186_s7, [#allocation3], %s1014_s24, %s1014_s24, %s1015_s25  }
 0x50b   :  { %1006 = dma.done.wait [#allocation3], 256  }
 0x50c   :  { %1007 = vsyncadd [#allocation3], 4294967040 }
 0x50d   :  { %815 = vsyncpa [#allocation3], 1 }

</bundles_post_ra>
